<compile_context>
chip_gen: v7x
topology: tpu7x:2x2x1
jax: 0.10.0
libtpu: 0.0.40
codegen_flags: <defaults>
</compile_context>

<pallas_src>
import functools

import jax
import jax.numpy as jnp
from jax import lax
from jax.experimental import pallas as pl
from jax.experimental.pallas import tpu as pltpu

_MIB = 1 << 20
_SLACK_BYTES = _MIB            # headroom for Mosaic-internal scratch / misc


# ---------------------------------------------------------------------------
# Generation-aware VMEM budgeting (v5e/v6e: 128 MiB physical, v7x: 64 MiB).
# ---------------------------------------------------------------------------
def _vmem_capacity_bytes():
    try:
        return int(pltpu.get_tpu_info().vmem_capacity_bytes)
    except Exception:          # interpret mode / unexpected backend
        return 64 * _MIB       # v7x-sized fallback: safe on every generation


def _vmem_budget_bytes():
    # Use ~3/4 of physical VMEM for our blocks: ~96 MiB on v5e/v6e, ~48 MiB
    # on v7x.  The remainder is headroom for compiler temporaries.
    return (_vmem_capacity_bytes() * 3) // 4


def _vmem_params(needed_bytes, semantics):
    cap = _vmem_capacity_bytes()
    limit = int(min(cap, max(32 * _MIB, (needed_bytes * 5) // 4)))
    return pltpu.CompilerParams(
        dimension_semantics=semantics, vmem_limit_bytes=limit)


def _round_up(x, m):
    return ((x + m - 1) // m) * m


def _padded_tile_bytes(rows, cols, itemsize):
    """VMEM bytes of a (rows, cols) tile incl. (sublane, lane) padding."""
    sub = 8 * max(1, 4 // itemsize)   # 8 rows f32, 16 bf16, 32 int8
    return _round_up(rows, sub) * _round_up(cols, 128) * itemsize


def _weights_vmem_bytes(C, I, w_itemsize):
    per_copy = (2 * _padded_tile_bytes(C, I, w_itemsize)      # wd, wu
                + _padded_tile_bytes(1, I, w_itemsize)        # bd
                + _padded_tile_bytes(C, 1, w_itemsize))       # bu
    return 2 * per_copy   # default double-buffering of constant-index blocks


# ---------------------------------------------------------------------------
# Kernels
# ---------------------------------------------------------------------------
def _se_single_pass_kernel(x_ref, wd_ref, bd_ref, wu_ref, bu_ref, o_ref):
    # x_ref / o_ref: (Nb, C, HW) native dtype.  HW on lanes, C on sublanes.
    x = x_ref[...]
    # Global average pool accumulated in f32, no f32 copy of the slab.
    pooled = jnp.mean(x, axis=2, keepdims=True, dtype=jnp.float32)  # (Nb,C,1)

    # Tiny SE excitation as VPU broadcast-multiply + reduce.  An M<=Nb MXU
    # matmul would waste the systolic array; these layouts need no
    # transpose / relayout (only XLU reduces on tiny operands).
    wd = wd_ref[...].astype(jnp.float32)                     # (C, I)
    bd = bd_ref[...].astype(jnp.float32)                     # (1, I)
    wu = wu_ref[...].astype(jnp.float32)                     # (C, I)
    bu = bu_ref[...].astype(jnp.float32)                     # (C, 1)

    h = jnp.sum(pooled * wd, axis=1, keepdims=True) + bd     # (Nb, 1, I)
    h = jnp.maximum(h, 0.0)
    z = jnp.sum(h * wu, axis=2, keepdims=True) + bu          # (Nb, C, 1)
    s = jax.nn.sigmoid(z)

    # Channel scale applied on the native-dtype slab (lane broadcast).
    o_ref[...] = x * s.astype(o_ref.dtype)


def _se_pool_fc_kernel(x_ref, wd_ref, bd_ref, wu_ref, bu_ref, s_ref, acc_ref,
                       *, inv_hw, hw, tile_hw):
    # x_ref: (C, tile_hw) tile.  s_ref: (C, 1) f32 out.  acc_ref: (C, 1) f32.
    j = pl.program_id(1)

    @pl.when(j == 0)
    def _init():
        acc_ref[...] = jnp.zeros_like(acc_ref)

    x = x_ref[...]
    if hw % tile_hw != 0:
        # Ragged last tile: lanes past the valid extent hold unspecified
        # data — zero them before accumulating into the mean.
        lane = lax.broadcasted_iota(jnp.int32, x.shape, dimension=1)
        valid = hw - j * tile_hw
        x = jnp.where(lane < valid, x, jnp.zeros((), x.dtype))
    acc_ref[...] += jnp.sum(x, axis=1, keepdims=True, dtype=jnp.float32)

    @pl.when(j == pl.num_programs(1) - 1)
    def _finalize():
        pooled = acc_ref[...] * inv_hw                       # (C, 1) f32
        wd = wd_ref[...].astype(jnp.float32)
        bd = bd_ref[...].astype(jnp.float32)
        wu = wu_ref[...].astype(jnp.float32)
        bu = bu_ref[...].astype(jnp.float32)
        h = jnp.sum(pooled * wd, axis=0, keepdims=True) + bd  # (1, I)
        h = jnp.maximum(h, 0.0)
        z = jnp.sum(h * wu, axis=1, keepdims=True) + bu       # (C, 1)
        s_ref[...] = jax.nn.sigmoid(z)


def _se_scale_kernel(x_ref, s_ref, o_ref):
    # Fully parallel channel-wise scale on lane-dense HW tiles.
    o_ref[...] = x_ref[...] * s_ref[...].astype(o_ref.dtype)


# ---------------------------------------------------------------------------
# pallas_call wrappers
# ---------------------------------------------------------------------------
def _se_one_pass(x, wd, bd, wu, bu, *, nb, vmem_bytes):
    N, C, HW = x.shape
    I = wd.shape[1]
    return pl.pallas_call(
        _se_single_pass_kernel,
        out_shape=jax.ShapeDtypeStruct((N, C, HW), x.dtype),
        grid_spec=pltpu.PrefetchScalarGridSpec(
            num_scalar_prefetch=0,
            grid=(N // nb,),
            in_specs=[
                pl.BlockSpec((nb, C, HW), lambda i: (i, 0, 0)),
                pl.BlockSpec((C, I), lambda i: (0, 0)),
                pl.BlockSpec((1, I), lambda i: (0, 0)),
                pl.BlockSpec((C, I), lambda i: (0, 0)),
                pl.BlockSpec((C, 1), lambda i: (0, 0)),
            ],
            out_specs=pl.BlockSpec((nb, C, HW), lambda i: (i, 0, 0)),
        ),
        compiler_params=_vmem_params(vmem_bytes, ("parallel",)),
    )(x, wd, bd, wu, bu)


def _se_two_pass(x, wd, bd, wu, bu, *, tile_hw):
    N, C, HW = x.shape
    I = wd.shape[1]
    itemsize = jnp.dtype(x.dtype).itemsize
    num_tiles = -(-HW // tile_hw)                            # cdiv
    w_bytes = _weights_vmem_bytes(C, I, jnp.dtype(wd.dtype).itemsize)
    x_tile_bytes = _padded_tile_bytes(C, tile_hw, itemsize)
    s_tile_bytes = _padded_tile_bytes(C, 1, 4)

    # Pass 1: HW-tiled pooling reduction (reduction axis last / "arbitrary"),
    # tiny excitation fused into the last tile.
    pool_vmem = (2 * x_tile_bytes + w_bytes + 3 * s_tile_bytes + _SLACK_BYTES)
    s = pl.pallas_call(
        functools.partial(_se_pool_fc_kernel, inv_hw=1.0 / float(HW),
                          hw=HW, tile_hw=tile_hw),
        out_shape=jax.ShapeDtypeStruct((N, C, 1), jnp.float32),
        grid_spec=pltpu.PrefetchScalarGridSpec(
            num_scalar_prefetch=0,
            grid=(N, num_tiles),
            in_specs=[
                pl.BlockSpec((None, C, tile_hw), lambda i, j: (i, 0, j)),
                pl.BlockSpec((C, I), lambda i, j: (0, 0)),
                pl.BlockSpec((1, I), lambda i, j: (0, 0)),
                pl.BlockSpec((C, I), lambda i, j: (0, 0)),
                pl.BlockSpec((C, 1), lambda i, j: (0, 0)),
            ],
            out_specs=pl.BlockSpec((None, C, 1), lambda i, j: (i, 0, 0)),
            scratch_shapes=[pltpu.VMEM((C, 1), jnp.float32)],
        ),
        compiler_params=_vmem_params(pool_vmem, ("parallel", "arbitrary")),
    )(x, wd, bd, wu, bu)

    # Pass 2: fully parallel scale on lane-dense HW tiles (ragged last tile's
    # out-of-bounds lanes are simply not written back).
    scale_vmem = 4 * x_tile_bytes + 2 * s_tile_bytes + _SLACK_BYTES
    return pl.pallas_call(
        _se_scale_kernel,
        out_shape=jax.ShapeDtypeStruct((N, C, HW), x.dtype),
        grid_spec=pltpu.PrefetchScalarGridSpec(
            num_scalar_prefetch=0,
            grid=(N, num_tiles),
            in_specs=[
                pl.BlockSpec((None, C, tile_hw), lambda i, j: (i, 0, j)),
                pl.BlockSpec((None, C, 1), lambda i, j: (i, 0, 0)),
            ],
            out_specs=pl.BlockSpec((None, C, tile_hw), lambda i, j: (i, 0, j)),
        ),
        compiler_params=_vmem_params(scale_vmem, ("parallel", "parallel")),
    )(x, s)


def se_block(x_nchw, w_down, b_down, w_up, b_up, *,
             _force_two_pass=False, _force_tile_hw=None):
    """SEBlock.forward.  x_nchw: (N, C, H, W).  w_down: (I, C), b_down: (I,),
    w_up: (C, I), b_up: (C,).  The PyTorch module's
    F.avg_pool2d(kernel_size=W) (and its view(-1, C, 1, 1)) only make sense
    for square spatial inputs, so H == W is asserted.
    """
    N, C, H, W = x_nchw.shape
    I = w_down.shape[0]
    if H != W:
        raise ValueError("SEBlock requires square spatial input (H == W); "
                         "F.avg_pool2d(kernel_size=W) is only a global pool "
                         "for square inputs.")
    HW = H * W
    itemsize = jnp.dtype(x_nchw.dtype).itemsize
    w_itemsize = jnp.dtype(w_down.dtype).itemsize

    # Free layout plumbing (no data movement): HW lands on the lane axis,
    # C on sublanes.
    x = x_nchw.reshape(N, C, HW)
    wd = jnp.transpose(w_down)        # (C, I)
    wu = w_up                         # (C, I): PyTorch layout already
    bd = b_down.reshape(1, I)
    bu = b_up.reshape(C, 1)

    budget = _vmem_budget_bytes()
    w_bytes = _weights_vmem_bytes(C, I, w_itemsize)
    block_budget = budget - w_bytes - _SLACK_BYTES     # for streaming x/o blocks
    per_img = _padded_tile_bytes(C, HW, itemsize)      # one (C, HW) slab in VMEM

    # Single-pass fit: double-buffered input + output slabs of one image.
    fits = block_budget > 0 and 4 * per_img <= block_budget

    if fits and not _force_two_pass:
        # Batch images per grid step: fewer grid steps (amortizes ~0.35us/step
        # overhead) and one large contiguous HBM DMA per step.
        sub_rows = 8 * max(1, 4 // itemsize)
        target = 4 * _MIB
        nb = 1
        for d in range(1, N + 1):
            if N % d != 0:
                continue
            if 4 * d * per_img > block_budget:
                break
            nb = d
            if d * C >= sub_rows and d * per_img >= target:
                break
        vmem_bytes = 4 * nb * per_img + w_bytes + _SLACK_BYTES
        out = _se_one_pass(x, wd, bd, wu, bu, nb=nb, vmem_bytes=vmem_bytes)
    else:
        # Two-pass HW-tiled path.  Tile size from a byte budget that includes
        # C and dtype, rounded to 128 lanes; ragged last tile handled by
        # cdiv grid + lane masking in pass 1.
        if _force_tile_hw is not None:
            tile_hw = int(_force_tile_hw)
        else:
            bytes_per_lane = 4 * _round_up(C, 8 * max(1, 4 // itemsize)) * itemsize
            tile_hw = (max(0, block_budget) // max(1, bytes_per_lane)) // 128 * 128
            tile_hw = min(tile_hw, max(128, (HW // 128) * 128))
        if tile_hw < 128:
            # TODO(synk): add channel tiling for C so large that even a
            # 128-lane HW tile exceeds the VMEM budget (C > ~25k on v7x).
            raise NotImplementedError(
                "SEBlock: channel count too large for a single-channel-block "
                "HW tile at this VMEM budget")
        out = _se_two_pass(x, wd, bd, wu, bu, tile_hw=tile_hw)

    return out.reshape(N, C, H, W)


def _reference(x_nchw, w_down, b_down, w_up, b_up):
    # Pure-JAX reference mirroring the PyTorch module (square inputs).
    x = x_nchw.astype(jnp.float32)
    pooled = jnp.mean(x, axis=(2, 3))                                 # (N, C)
    h = jnp.maximum(pooled @ w_down.T.astype(jnp.float32)
                    + b_down.astype(jnp.float32), 0.0)                # (N, I)
    s = jax.nn.sigmoid(h @ w_up.T.astype(jnp.float32)
                       + b_up.astype(jnp.float32))                    # (N, C)
    return x * s[:, :, None, None]


if __name__ == "__main__":
    key = jax.random.PRNGKey(0)
    keys = jax.random.split(key, 8)

    # SEBlock(input_channels=4, internal_neurons=2) at NCHW (2, 4, 16, 16).
    N, C, H, W, INTERNAL = 2, 4, 16, 16, 2
    x = jax.random.normal(keys[0], (N, C, H, W), dtype=jnp.float32)
    w_down = 0.1 * jax.random.normal(keys[1], (INTERNAL, C), dtype=jnp.float32)
    b_down = 0.1 * jax.random.normal(keys[2], (INTERNAL,), dtype=jnp.float32)
    w_up = 0.1 * jax.random.normal(keys[3], (C, INTERNAL), dtype=jnp.float32)
    b_up = 0.1 * jax.random.normal(keys[4], (C,), dtype=jnp.float32)

    out = jax.block_until_ready(se_block(x, w_down, b_down, w_up, b_up))
    ref = _reference(x, w_down, b_down, w_up, b_up)
    assert out.shape == (N, C, H, W)
    assert jnp.allclose(out, ref, atol=1e-5, rtol=1e-5), "single-pass mismatch"

    # N == 1 now stays on the bandwidth-optimal single-pass path.
    x2 = jax.random.normal(keys[5], (1, C, 32, 32), dtype=jnp.float32)
    out2 = jax.block_until_ready(se_block(x2, w_down, b_down, w_up, b_up))
    ref2 = _reference(x2, w_down, b_down, w_up, b_up)
    assert jnp.allclose(out2, ref2, atol=1e-5, rtol=1e-5), "N==1 mismatch"

    # Exercise the two-pass HW-tiled path including the ragged last tile
    # (HW = 20*20 = 400, tile_hw = 128 -> 4 tiles, last tile has 16 lanes).
    x3 = jax.random.normal(keys[6], (2, C, 20, 20), dtype=jnp.float32)
    out3 = jax.block_until_ready(
        se_block(x3, w_down, b_down, w_up, b_up,
                 _force_two_pass=True, _force_tile_hw=128))
    ref3 = _reference(x3, w_down, b_down, w_up, b_up)
    assert jnp.allclose(out3, ref3, atol=1e-5, rtol=1e-5), "two-pass mismatch"

    # bf16 inputs: f32 pooling accumulation inside the kernel, scale in bf16.
    xb = jax.random.normal(keys[7], (4, C, 16, 16), dtype=jnp.bfloat16)
    outb = jax.block_until_ready(se_block(xb, w_down, b_down, w_up, b_up))
    refb = _reference(xb, w_down, b_down, w_up, b_up)
    assert jnp.allclose(outb.astype(jnp.float32), refb,
                        atol=5e-2, rtol=5e-2), "bf16 mismatch"

    print("KERNEL_OK")
</pallas_src>

<mosaic_0001>
module attributes {stable_mosaic.version = 11 : i64} {
  func.func @_se_single_pass_kernel(%arg0: i32, %arg1: memref<2x4x256xf32, #tpu.memory_space<vmem>>, %arg2: memref<4x2xf32, #tpu.memory_space<vmem>>, %arg3: memref<1x2xf32, #tpu.memory_space<vmem>>, %arg4: memref<4x2xf32, #tpu.memory_space<vmem>>, %arg5: memref<4x1xf32, #tpu.memory_space<vmem>>, %arg6: memref<2x4x256xf32, #tpu.memory_space<vmem>>) attributes {dimension_semantics = [#tpu.dimension_semantics<parallel>], iteration_bounds = array<i64: 1>, scalar_prefetch = 0 : i64, scratch_operands = 0 : i64, tpu.core_type = #tpu.core_type<tc>, window_params = [{transform_indices = @transform_0, window_bounds = array<i64: 2, 4, 256>}, {pipeline_mode = #tpu.pipeline_mode<synchronous>, transform_indices = @transform_1, window_bounds = array<i64: 4, 2>}, {pipeline_mode = #tpu.pipeline_mode<synchronous>, transform_indices = @transform_2, window_bounds = array<i64: 1, 2>}, {pipeline_mode = #tpu.pipeline_mode<synchronous>, transform_indices = @transform_3, window_bounds = array<i64: 4, 2>}, {pipeline_mode = #tpu.pipeline_mode<synchronous>, transform_indices = @transform_4, window_bounds = array<i64: 4, 1>}, {transform_indices = @transform_5, window_bounds = array<i64: 2, 4, 256>}]} {
    %c0 = arith.constant 0 : index
    %c0_0 = arith.constant 0 : index
    %c0_1 = arith.constant 0 : index
    %0 = vector.load %arg1[%c0, %c0_0, %c0_1] : memref<2x4x256xf32, #tpu.memory_space<vmem>>, vector<2x4x256xf32>
    %cst = arith.constant dense<0.000000e+00> : vector<2x4xf32>
    %1 = vector.multi_reduction <add>, %0, %cst [2] : vector<2x4x256xf32> to vector<2x4xf32>
    %2 = vector.shape_cast %1 : vector<2x4xf32> to vector<2x4x1xf32>
    %cst_2 = arith.constant 2.560000e+02 : f32
    %3 = vector.broadcast %cst_2 : f32 to vector<2x4x1xf32>
    %4 = arith.divf %2, %3 : vector<2x4x1xf32>
    %c0_3 = arith.constant 0 : index
    %c0_4 = arith.constant 0 : index
    %5 = vector.load %arg2[%c0_3, %c0_4] : memref<4x2xf32, #tpu.memory_space<vmem>>, vector<4x2xf32>
    %c0_5 = arith.constant 0 : index
    %c0_6 = arith.constant 0 : index
    %6 = vector.load %arg3[%c0_5, %c0_6] : memref<1x2xf32, #tpu.memory_space<vmem>>, vector<1x2xf32>
    %c0_7 = arith.constant 0 : index
    %c0_8 = arith.constant 0 : index
    %7 = vector.load %arg4[%c0_7, %c0_8] : memref<4x2xf32, #tpu.memory_space<vmem>>, vector<4x2xf32>
    %c0_9 = arith.constant 0 : index
    %c0_10 = arith.constant 0 : index
    %8 = vector.load %arg5[%c0_9, %c0_10] : memref<4x1xf32, #tpu.memory_space<vmem>>, vector<4x1xf32>
    %9 = vector.shape_cast %5 : vector<4x2xf32> to vector<1x4x2xf32>
    %10 = vector.broadcast %4 : vector<2x4x1xf32> to vector<2x4x2xf32>
    %11 = vector.broadcast %9 : vector<1x4x2xf32> to vector<2x4x2xf32>
    %12 = arith.mulf %10, %11 : vector<2x4x2xf32>
    %cst_11 = arith.constant dense<0.000000e+00> : vector<2x2xf32>
    %13 = vector.multi_reduction <add>, %12, %cst_11 [1] : vector<2x4x2xf32> to vector<2x2xf32>
    %14 = vector.shape_cast %13 : vector<2x2xf32> to vector<2x1x2xf32>
    %15 = vector.shape_cast %6 : vector<1x2xf32> to vector<1x1x2xf32>
    %16 = vector.broadcast %15 : vector<1x1x2xf32> to vector<2x1x2xf32>
    %17 = arith.addf %14, %16 : vector<2x1x2xf32>
    %cst_12 = arith.constant 0.000000e+00 : f32
    %18 = vector.broadcast %cst_12 : f32 to vector<2x1x2xf32>
    %19 = arith.maximumf %17, %18 : vector<2x1x2xf32>
    %20 = vector.shape_cast %7 : vector<4x2xf32> to vector<1x4x2xf32>
    %21 = vector.broadcast %19 : vector<2x1x2xf32> to vector<2x4x2xf32>
    %22 = vector.broadcast %20 : vector<1x4x2xf32> to vector<2x4x2xf32>
    %23 = arith.mulf %21, %22 : vector<2x4x2xf32>
    %cst_13 = arith.constant dense<0.000000e+00> : vector<2x4xf32>
    %24 = vector.multi_reduction <add>, %23, %cst_13 [2] : vector<2x4x2xf32> to vector<2x4xf32>
    %25 = vector.shape_cast %24 : vector<2x4xf32> to vector<2x4x1xf32>
    %26 = vector.shape_cast %8 : vector<4x1xf32> to vector<1x4x1xf32>
    %27 = vector.broadcast %26 : vector<1x4x1xf32> to vector<2x4x1xf32>
    %28 = arith.addf %25, %27 : vector<2x4x1xf32>
    %29 = arith.negf %28 : vector<2x4x1xf32>
    %30 = math.exp %29 : vector<2x4x1xf32>
    %cst_14 = arith.constant 1.000000e+00 : f32
    %31 = vector.broadcast %cst_14 : f32 to vector<2x4x1xf32>
    %32 = arith.addf %31, %30 : vector<2x4x1xf32>
    %33 = arith.divf %31, %32 : vector<2x4x1xf32>
    %34 = vector.broadcast %33 : vector<2x4x1xf32> to vector<2x4x256xf32>
    %35 = arith.mulf %0, %34 : vector<2x4x256xf32>
    %c0_15 = arith.constant 0 : index
    %c0_16 = arith.constant 0 : index
    %c0_17 = arith.constant 0 : index
    %36 = vector.load %arg6[%c0_15, %c0_16, %c0_17] : memref<2x4x256xf32, #tpu.memory_space<vmem>>, vector<2x4x256xf32>
    tpu.vector_store %arg6[%c0_15, %c0_16, %c0_17], %35 {strides = array<i32>} : memref<2x4x256xf32, #tpu.memory_space<vmem>>, vector<2x4x256xf32>,
    return
  }
  func.func @transform_0(%arg0: i32) -> (i32, i32, i32) {
    %c0_i32 = arith.constant 0 : i32
    %c0_i32_0 = arith.constant 0 : i32
    %c0_i32_1 = arith.constant 0 : i32
    return %arg0, %c0_i32, %c0_i32_0 : i32, i32, i32
  }
  func.func @transform_1(%arg0: i32) -> (i32, i32) {
    %c0_i32 = arith.constant 0 : i32
    %c0_i32_0 = arith.constant 0 : i32
    %c0_i32_1 = arith.constant 0 : i32
    return %c0_i32, %c0_i32_0 : i32, i32
  }
  func.func @transform_2(%arg0: i32) -> (i32, i32) {
    %c0_i32 = arith.constant 0 : i32
    %c0_i32_0 = arith.constant 0 : i32
    %c0_i32_1 = arith.constant 0 : i32
    return %c0_i32, %c0_i32_0 : i32, i32
  }
  func.func @transform_3(%arg0: i32) -> (i32, i32) {
    %c0_i32 = arith.constant 0 : i32
    %c0_i32_0 = arith.constant 0 : i32
    %c0_i32_1 = arith.constant 0 : i32
    return %c0_i32, %c0_i32_0 : i32, i32
  }
  func.func @transform_4(%arg0: i32) -> (i32, i32) {
    %c0_i32 = arith.constant 0 : i32
    %c0_i32_0 = arith.constant 0 : i32
    %c0_i32_1 = arith.constant 0 : i32
    return %c0_i32, %c0_i32_0 : i32, i32
  }
  func.func @transform_5(%arg0: i32) -> (i32, i32, i32) {
    %c0_i32 = arith.constant 0 : i32
    %c0_i32_0 = arith.constant 0 : i32
    %c0_i32_1 = arith.constant 0 : i32
    return %arg0, %c0_i32, %c0_i32_0 : i32, i32, i32
  }
}

</mosaic_0001>

<bundles_post_ra>
// kernel: tpu_custom_call.1
= control target key start
LH: loop header
LB: loop body
LE: loop exit
PB: predicated region body
PF: predicated region fallthrough
CT: control target
= control target key end

     0   :  { %vm29_vm0 = vcmask 1043456   ;;  %s266_s0 = inlined_call_operand.vmem [shape: f32[2,4,256], index: 0, kind: input, shape index: {}]   ;;  %s267_s1 = inlined_call_operand.vmem [shape: f32[4,2], index: 1, kind: input, shape index: {}]   ;;  %s268_s2 = inlined_call_operand.vmem [shape: f32[1,2], index: 2, kind: input, shape index: {}]   ;;  %s269_s3 = inlined_call_operand.vmem [shape: f32[4,2], index: 3, kind: input, shape index: {}]   ;;  %s270_s4 = inlined_call_operand.vmem [shape: f32[4,1], index: 4, kind: input, shape index: {}]   ;;  %s271_s5 = inlined_call_operand.hbm [shape: f32[2,4,256], index: 5, kind: output, shape index: {}]  }
   0x1   :  { %v223_v0 = vld [vmem:[%s266_s0] sm:$0xff]  ;;  %v228_v1 = vld [vmem:[%s266_s0 + $0x8] sm:$0xff] }
   0x2   :  { %v25_v2 = vcombine.high %v223_v0, %v223_v0  ;;  %v30_v3 = vsel %vm29_vm0, %v223_v0, 0.0  ;;  %v26_v4 = vcombine.high %v228_v1, %v228_v1 }
   0x3   :  { %10 = vsyncpa [#allocation3], 0  ;;  %v35_v6 = vsel %vm29_vm0, %v228_v1, 0.0  ;;  %v43_v10 = vld [vmem:[%s267_s1] sm:$0xf]  ;;  %vm49_vm1 = vcmask 11264   ;;  %v68_v22 = vlaneseq }
   0x4   :  { %v31_v5 = vsel %vm29_vm0, %v25_v2, 0.0  ;;  %v36_v7 = vsel %vm29_vm0, %v26_v4, 0.0  ;;  %v44_v29 = vld [vmem:[%s268_s2] sm:$0x1]  ;;  %v185_v46 = vmov 0  }
   0x5   :  { %v32_v8 = vadd.f32 %v31_v5, %v30_v3  ;;  %v37_v9 = vadd.f32 %v36_v7, %v35_v6  ;;  %v69_v27 = vshrl.u32 %v68_v22, 7  ;;  %v45_v37 = vld [vmem:[%s269_s3] sm:$0xf]  ;;  %149 = vset.pattern.permute.xlu0 %v185_v46  ;;  %150 = vset.pattern.permute.xlu1 %v185_v46  ;;  %v186_v60 = vmov 839922192   ;;  %s187_s3 = smov [#allocation2]  }
   0x6   :  { %v46_v47 = vld [vmem:[%s270_s4] sm:$0xf]  ;;  %v107_v61 = vunpack.c.l.s4 %v186_v60  ;;  %s131_s4 = sshll.u32 %s187_s3, 4  ;;  %s132_s4 = int_to_ptr.vmem [resolvable:$true] %s131_s4 }
   0x7   :  { %33 = vadd.xlane.f32.xlu0 %v32_v8  ;;  %v70_v33 = vsub.s32 0, %v69_v27  ;;  %s161_s27 = scalar_lea.vmem %s132_s4, 256  ;;  %p166_p1 = scmp.lt.s32.totalorder %s132_s4, %s132_s4 }
   0x8   :  { %v108_v62 = vunpack.c.0.s8 %v107_v61  ;;  %p162_p0 = scmp.ne.s32.totalorder %s132_s4, %s161_s27  ;;  %p167_p2 = scmp.lt.s32.totalorder %s161_s27, %s161_s27 }
   0xa   :  { %v111_v63 = vsub.s32 %v108_v62, %v69_v27  ;;  %p168_p3 = por %p167_p2, %p166_p1 }
   0xb   :  { %38 = vadd.xlane.f32.xlu0 %v37_v9 }
   0xc   :  { %p169_p4 = pnand %p168_p3, %p162_p0 }
  0x94   :  { %v34_v11 = vpop.xlane.xlu0 %33 }
  0x95   :  { %v41_v12 = vmul.f32 0.00390625, %v34_v11 }
  0x97   :  { %v47_v13 = vmul.f32 %v43_v10, %v41_v12 }
  0x98   :  { %v39_v14 = vpop.xlane.xlu0 %38 }
  0x99   :  { %v42_v15 = vmul.f32 0.00390625, %v39_v14  ;;  %v50_v16 = vsel %vm49_vm1, %v47_v13, 0.0 }
  0x9a   :  { %v51_v17 = vrot.slane %v50_v16, 4 }
  0x9b   :  { %v48_v18 = vmul.f32 %v43_v10, %v42_v15 }
  0x9c   :  { %v52_v19 = vadd.f32 %v51_v17, %v50_v16 }
  0x9d   :  { %v57_v20 = vsel %vm49_vm1, %v48_v18, 0.0 }
  0x9e   :  { %v53_v21 = vrot.slane %v52_v19, 2  ;;  %v58_v23 = vrot.slane %v57_v20, 4 }
  0xa0   :  { %v54_v24 = vadd.f32 %v53_v21, %v52_v19  ;;  %v59_v25 = vadd.f32 %v58_v23, %v57_v20 }
  0xa2   :  { %v55_v26 = vrot.slane %v54_v24, 1  ;;  %v60_v28 = vrot.slane %v59_v25, 2 }
  0xa4   :  { %v56_v30 = vadd.f32 %v55_v26, %v54_v24  ;;  %v61_v31 = vadd.f32 %v60_v28, %v59_v25 }
  0xa6   :  { %v64_v32 = vadd.f32 %v56_v30, %v44_v29  ;;  %v62_v34 = vrot.slane %v61_v31, 1 }
  0xa8   :  { %v66_v35 = vmax.f32 %v64_v32, 0.0  ;;  %v63_v36 = vadd.f32 %v62_v34, %v61_v31 }
  0xaa   :  { %v71_v38 = vrot.slane %v66_v35, %v70_v33  ;;  %v65_v39 = vadd.f32 %v63_v36, %v44_v29 }
  0xac   :  { %v76_v40 = vmul.f32 %v71_v38, %v45_v37  ;;  %v67_v41 = vmax.f32 %v65_v39, 0.0 }
  0xae   :  { %v78_v42 = vsel %vm49_vm1, %v76_v40, 0.0  ;;  %v75_v43 = vrot.slane %v67_v41, %v70_v33 }
  0xaf   :  { %79 = vadd.xlane.f32.xlu1 %v78_v42 }
  0xb0   :  { %v77_v44 = vmul.f32 %v75_v43, %v45_v37 }
  0xb2   :  { %v81_v45 = vsel %vm49_vm1, %v77_v44, 0.0 }
  0xb3   :  { %82 = vadd.xlane.f32.xlu1 %v81_v45 }
 0x13c   :  { %v80_v48 = vpop.xlane.xlu1 %79 }
 0x13d   :  { %v84_v49 = vadd.f32 %v80_v48, %v46_v47 }
 0x13f   :  { %v142_v50 = vmul.f32 -1.442695, %v84_v49 }
 0x140   :  { %v83_v51 = vpop.xlane.xlu1 %82 }
 0x141   :  { %153 = vpow2.f32 %v142_v50  ;;  %v85_v52 = vadd.f32 %v83_v51, %v46_v47 }
 0x143   :  { %v143_v53 = vmul.f32 -1.442695, %v85_v52 }
 0x145   :  { %155 = vpow2.f32 %v143_v53 }
 0x14b   :  { %v154_v54 = vpop.eup %153 }
 0x14c   :  { %v92_v55 = vadd.f32 1.0, %v154_v54 }
 0x14e   :  { %157 = vrcp.f32 %v92_v55 }
 0x14f   :  { %v156_v56 = vpop.eup %155 }
 0x150   :  { %v93_v57 = vadd.f32 1.0, %v156_v56 }
 0x152   :  { %159 = vrcp.f32 %v93_v57 }
 0x158   :  { %v158_v58 = vpop.eup %157 }
 0x159   :  { %100 = vperm.xlu0 %149, %v158_v58  }
 0x15c   :  { %v160_v59 = vpop.eup %159 }
 0x15d   :  { %104 = vperm.xlu1 %150, %v160_v59  }
 0x1d8   :  { %v101_v2 = vpop.permute.xlu0 %100 }
 0x1d9   :  { %v112_v3 = vrot.slane %v101_v2, %v111_v63 }
 0x1db   :  { %v122_v4 = vmul.f32 %v112_v3, %v223_v0 }
 0x1dc   :  { %v105_v5 = vpop.permute.xlu1 %104 }
 0x1dd   :  { %124 = vst [vmem:[#allocation2] sm:$0xff] %v122_v4  ;;  %v119_v6 = vrot.slane %v105_v5, %v111_v63 }
 0x1df   :  { %v123_v7 = vmul.f32 %v119_v6, %v228_v1 }
 0x1e1   :  { %125 = vst [vmem:[#allocation2 + $0x8] sm:$0xff] %v123_v7 }
 0x1e2   :  { %172 = shalt.err (!%p169_p4)
}
 0x1e3   :  { %s173_s30 = scalar_lea.hbm %s271_s5, 256 }
 0x1e4   :  { %p174_p5 = scmp.ne.s32.totalorder %s271_s5, %s173_s30  ;;  %p177_p6 = scmp.lt.u32.totalorder %s173_s30, %s271_s5 }
 0x1e6   :  { %p179_p7 = pnand %p177_p6, %p174_p5 }
 0x1e8   :  { %182 = shalt.err (!%p179_p7)
}
 0x1e9   :  { %s188_s10 = smov 128   ;;  %s189_s11 = smov 8  }
 0x1ea   :  { %137 = dma.vmem_to_hbm [thread:$0]  %s132_s4, 256, %s271_s5, [#allocation3], %s188_s10, %s188_s10, %s189_s11  }
 0x1eb   :  { %183 = dma.done.wait [#allocation3], 256  }
 0x1ec   :  { %184 = vsyncadd [#allocation3], 4294967040 }
 0x1ed   :  { %141 = vsyncpa [#allocation3], 1 }

</bundles_post_ra>
